<compile_context>
chip_gen: v7x
topology: tpu7x:2x2x1
jax: 0.10.0
libtpu: 0.0.40
codegen_flags: <defaults>
</compile_context>

<pallas_src>
import functools
import math

import jax
import jax.numpy as jnp
import numpy as np
from jax.experimental import pallas as pl
from jax.experimental.pallas import tpu as pltpu


def _rope_kernel(tab_ref, x_ref, o_ref):
    """2D-RoPE rotation on one (TB, TR, D) interleaved tile.

    tab_ref: (2, TR, D) f32 -- [0] interleaved cos, [1] interleaved signed sin
    x_ref:   (TB, TR, D) native-dtype interleaved (re, im) input
    o_ref:   (TB, TR, D) output
    """
    c = tab_ref[0]                            # (TR, D)
    s = tab_ref[1]                            # (TR, D), sign (-,+,-,+,...) folded in
    tr, d = c.shape

    # Parity mask built once per tile (2-D, amortized over the TB rows below).
    lane = jax.lax.broadcasted_iota(jnp.int32, (tr, d), 1)
    even = (lane & 1) == 0

    for b in range(x_ref.shape[0]):           # TB is a small static constant
        x = x_ref[b].astype(jnp.float32)      # (TR, D)
        # Adjacent-pair swap x_swap[k] = x[k ^ 1]: two static lane rotations
        # (XLU, free slot) + one parity select.  roll(x, s)[k] = x[k - s].
        x_up = pltpu.roll(x, shift=d - 1, axis=1)   # x[:, k + 1]
        x_dn = pltpu.roll(x, shift=1, axis=1)       # x[:, k - 1]
        x_swap = jnp.where(even, x_up, x_dn)
        # (cos + i sin) * (re + i im), kept interleaved:
        #   out[2k]   = cos*re - sin*im
        #   out[2k+1] = cos*im + sin*re
        o_ref[b] = (x * c + x_swap * s).astype(o_ref.dtype)


@functools.lru_cache(maxsize=32)
def _rope_tables(H, W, D, base):
    """Interleaved cos / signed-sin tables, (2, H*W, D) f32. Cached per shape."""
    k_max = D // 4
    Dh = D // 2
    theta = 1.0 / (base ** (jnp.arange(k_max, dtype=jnp.float32) / k_max))
    ang_h = jnp.arange(H, dtype=jnp.float32)[:, None, None] * theta     # (H,1,k)
    ang_w = jnp.arange(W, dtype=jnp.float32)[None, :, None] * theta     # (1,W,k)
    angles = jnp.concatenate(
        [jnp.broadcast_to(ang_h, (H, W, k_max)),
         jnp.broadcast_to(ang_w, (H, W, k_max))], axis=-1)              # (H,W,Dh)
    cos_t = jnp.repeat(jnp.cos(angles), 2, axis=-1).reshape(H * W, D)
    sign = jnp.tile(jnp.array([-1.0, 1.0], jnp.float32), Dh)            # (D,)
    sin_t = (jnp.repeat(jnp.sin(angles), 2, axis=-1) * sign).reshape(H * W, D)
    tab = jnp.stack([cos_t, sin_t], axis=0)                             # (2,HW,D)
    return jax.block_until_ready(tab)


def _choose_tiles(B, HW, D, x_bytes, out_bytes, row_tile):
    """Pick (TR, TB) so each grid step moves a multi-MiB, VMEM-safe block."""
    STEP_BYTES = 6 * 1024 * 1024          # x + out + tables per step (single buffer)
    per_row = D * (x_bytes + out_bytes) + 2 * D * 4
    if row_tile is not None:
        tr = min(HW, int(row_tile))
    else:
        tr = min(HW, max(8, STEP_BYTES // per_row))
    if tr < HW:
        tr = max(8, (tr // 8) * 8)        # second-to-last block dim: x8 or full
    tb = 1
    if row_tile is None and tr == HW:
        # Fold (part of) the batch in while staying under the step budget.
        rem = STEP_BYTES - 2 * D * 4 * HW
        tb = int(min(B, 16, max(1, rem // (HW * D * (x_bytes + out_bytes)))))
    return tr, tb


def rope_forward(x, dim, base=10000, *, row_tile=None, out_dtype=None):
    """Pallas RoPE forward matching the PyTorch module.

    x: (..., H, W, D) with D == dim.  Output dtype is float32 by default
    (module contract); pass out_dtype=x.dtype to halve write traffic.
    """
    assert x.ndim >= 3, "RoPE expects at least (H, W, D)"
    *lead, H, W, D = x.shape
    assert D == dim
    assert D % 4 == 0, "feature dim must be divisible by 4 for 2D RoPE"
    out_dtype = np.dtype(jnp.float32 if out_dtype is None else out_dtype)

    B = math.prod(lead)
    HW = H * W

    tab = _rope_tables(int(H), int(W), int(D), base)   # cached host precompute
    x3 = x.reshape(B, HW, D)                           # stays in native dtype

    TR, TB = _choose_tiles(B, HW, D, x.dtype.itemsize, out_dtype.itemsize, row_tile)
    # Rows outer, batch inner -> the table block index is unchanged across the
    # inner axis, so its DMA is skipped and it stays resident in VMEM.
    grid = (pl.cdiv(HW, TR), pl.cdiv(B, TB))

    tab_spec = pl.BlockSpec((2, TR, D), lambda r, b: (0, r, 0))
    x_spec = pl.BlockSpec((TB, TR, D), lambda r, b: (b, r, 0))
    o_spec = pl.BlockSpec((TB, TR, D), lambda r, b: (b, r, 0))

    out = pl.pallas_call(
        _rope_kernel,
        out_shape=jax.ShapeDtypeStruct((B, HW, D), out_dtype),
        grid_spec=pltpu.PrefetchScalarGridSpec(
            num_scalar_prefetch=0,
            grid=grid,
            in_specs=[tab_spec, x_spec],
            out_specs=o_spec,
        ),
        compiler_params=pltpu.CompilerParams(
            dimension_semantics=("parallel", "parallel"),
            vmem_limit_bytes=32 * 1024 * 1024),
    )(tab, x3)

    return out.reshape(*lead, H, W, D)


def rope_reference(x, dim, base=10000):
    """Plain-JAX reference mirroring the PyTorch module."""
    *lead, H, W, D = x.shape
    k_max = D // 4
    Dh = D // 2
    theta = 1.0 / (base ** (jnp.arange(k_max, dtype=jnp.float32) / k_max))
    gh, gw = jnp.meshgrid(jnp.arange(H, dtype=jnp.float32),
                          jnp.arange(W, dtype=jnp.float32), indexing="ij")
    angles = jnp.concatenate(
        [gh[..., None] * theta, gw[..., None] * theta], axis=-1)
    c, s = jnp.cos(angles), jnp.sin(angles)
    xp = x.astype(jnp.float32).reshape(*lead, H, W, Dh, 2)
    xr, xi = xp[..., 0], xp[..., 1]
    out_re = c * xr - s * xi
    out_im = c * xi + s * xr
    return jnp.stack([out_re, out_im], axis=-1).reshape(*lead, H, W, D)


if __name__ == "__main__":
    key = jax.random.PRNGKey(0)
    B, H, W, D = 2, 8, 8, 128
    x = jax.random.normal(key, (B, H, W, D), dtype=jnp.float32)

    # float32 activations -> float32 output (module semantics)
    out = jax.block_until_ready(rope_forward(x, dim=D, base=10000))
    ref = rope_reference(x, dim=D, base=10000)
    assert out.shape == (B, H, W, D)
    assert out.dtype == jnp.float32
    assert jnp.allclose(out, ref, atol=1e-5, rtol=1e-5)

    # bf16 activations stay bf16 on the wire; f32 upcast happens in-register.
    xb = x.astype(jnp.bfloat16)
    out_b = jax.block_until_ready(rope_forward(xb, dim=D, base=10000))
    ref_b = rope_reference(xb, dim=D, base=10000)
    assert out_b.dtype == jnp.float32
    assert jnp.allclose(out_b, ref_b, atol=1e-4, rtol=1e-4)

    # Opt-in bf16 output (halves write traffic on a mem-bound kernel; deviates
    # from the torch "always f32" contract, hence gated behind out_dtype).
    out_bo = jax.block_until_ready(
        rope_forward(x, dim=D, base=10000, out_dtype=jnp.bfloat16))
    assert out_bo.dtype == jnp.bfloat16
    assert jnp.allclose(out_bo.astype(jnp.float32), ref, atol=5e-2, rtol=5e-2)

    # Ragged spatial extent + forced small row tile exercises the partial-block
    # (edge-clipped) path of the tiled grid.
    x2 = jax.random.normal(jax.random.PRNGKey(1), (2, 5, 9, 128), jnp.float32)
    out2 = jax.block_until_ready(rope_forward(x2, dim=128, row_tile=16))
    ref2 = rope_reference(x2, dim=128)
    assert jnp.allclose(out2, ref2, atol=1e-5, rtol=1e-5)

    print("KERNEL_OK")
</pallas_src>

<mosaic_0001>
module attributes {stable_mosaic.version = 11 : i64} {
  func.func @_rope_kernel(%arg0: i32, %arg1: i32, %arg2: memref<2x64x128xf32, #tpu.memory_space<vmem>>, %arg3: memref<2x64x128xf32, #tpu.memory_space<vmem>>, %arg4: memref<2x64x128xf32, #tpu.memory_space<vmem>>) attributes {dimension_semantics = [#tpu.dimension_semantics<parallel>, #tpu.dimension_semantics<parallel>], iteration_bounds = array<i64: 1, 1>, scalar_prefetch = 0 : i64, scratch_operands = 0 : i64, tpu.core_type = #tpu.core_type<tc>, window_params = [{transform_indices = @transform_0, window_bounds = array<i64: 2, 64, 128>}, {transform_indices = @transform_1, window_bounds = array<i64: 2, 64, 128>}, {transform_indices = @transform_2, window_bounds = array<i64: 2, 64, 128>}]} {
    %c0 = arith.constant 0 : index
    %c0_0 = arith.constant 0 : index
    %c0_1 = arith.constant 0 : index
    %0 = vector.load %arg2[%c0, %c0_0, %c0_1] : memref<2x64x128xf32, #tpu.memory_space<vmem>>, vector<1x64x128xf32>
    %1 = vector.shape_cast %0 : vector<1x64x128xf32> to vector<64x128xf32>
    %c1 = arith.constant 1 : index
    %c0_2 = arith.constant 0 : index
    %c0_3 = arith.constant 0 : index
    %2 = vector.load %arg2[%c1, %c0_2, %c0_3] : memref<2x64x128xf32, #tpu.memory_space<vmem>>, vector<1x64x128xf32>
    %3 = vector.shape_cast %2 : vector<1x64x128xf32> to vector<64x128xf32>
    %4 = tpu.iota {dimensions = array<i32: 1>} : vector<64x128xi32>
    %c1_i32 = arith.constant 1 : i32
    %5 = vector.broadcast %c1_i32 : i32 to vector<64x128xi32>
    %6 = arith.andi %4, %5 : vector<64x128xi32>
    %c0_i32 = arith.constant 0 : i32
    %7 = vector.broadcast %c0_i32 : i32 to vector<64x128xi32>
    %8 = arith.cmpi eq, %6, %7 : vector<64x128xi32>
    %c0_4 = arith.constant 0 : index
    %c0_5 = arith.constant 0 : index
    %c0_6 = arith.constant 0 : index
    %9 = vector.load %arg3[%c0_4, %c0_5, %c0_6] : memref<2x64x128xf32, #tpu.memory_space<vmem>>, vector<1x64x128xf32>
    %10 = vector.shape_cast %9 : vector<1x64x128xf32> to vector<64x128xf32>
    %c127_i32 = arith.constant 127 : i32
    %11 = tpu.dynamic_rotate %10 by %c127_i32 dim 1 : vector<64x128xf32>, i32 -> vector<64x128xf32>
    %c1_i32_7 = arith.constant 1 : i32
    %12 = tpu.dynamic_rotate %10 by %c1_i32_7 dim 1 : vector<64x128xf32>, i32 -> vector<64x128xf32>
    %13 = arith.select %8, %11, %12 : vector<64x128xi1>, vector<64x128xf32>
    %14 = arith.mulf %10, %1 : vector<64x128xf32>
    %15 = arith.mulf %13, %3 : vector<64x128xf32>
    %16 = arith.addf %14, %15 : vector<64x128xf32>
    %c0_8 = arith.constant 0 : index
    %c0_9 = arith.constant 0 : index
    %c0_10 = arith.constant 0 : index
    %17 = vector.load %arg4[%c0_8, %c0_9, %c0_10] : memref<2x64x128xf32, #tpu.memory_space<vmem>>, vector<1x64x128xf32>
    %18 = vector.shape_cast %17 : vector<1x64x128xf32> to vector<64x128xf32>
    %19 = vector.shape_cast %16 : vector<64x128xf32> to vector<1x64x128xf32>
    tpu.vector_store %arg4[%c0_8, %c0_9, %c0_10], %19 {strides = array<i32>} : memref<2x64x128xf32, #tpu.memory_space<vmem>>, vector<1x64x128xf32>,
    %c1_11 = arith.constant 1 : index
    %c0_12 = arith.constant 0 : index
    %c0_13 = arith.constant 0 : index
    %20 = vector.load %arg3[%c1_11, %c0_12, %c0_13] : memref<2x64x128xf32, #tpu.memory_space<vmem>>, vector<1x64x128xf32>
    %21 = vector.shape_cast %20 : vector<1x64x128xf32> to vector<64x128xf32>
    %c127_i32_14 = arith.constant 127 : i32
    %22 = tpu.dynamic_rotate %21 by %c127_i32_14 dim 1 : vector<64x128xf32>, i32 -> vector<64x128xf32>
    %c1_i32_15 = arith.constant 1 : i32
    %23 = tpu.dynamic_rotate %21 by %c1_i32_15 dim 1 : vector<64x128xf32>, i32 -> vector<64x128xf32>
    %24 = arith.select %8, %22, %23 : vector<64x128xi1>, vector<64x128xf32>
    %25 = arith.mulf %21, %1 : vector<64x128xf32>
    %26 = arith.mulf %24, %3 : vector<64x128xf32>
    %27 = arith.addf %25, %26 : vector<64x128xf32>
    %c1_16 = arith.constant 1 : index
    %c0_17 = arith.constant 0 : index
    %c0_18 = arith.constant 0 : index
    %28 = vector.load %arg4[%c1_16, %c0_17, %c0_18] : memref<2x64x128xf32, #tpu.memory_space<vmem>>, vector<1x64x128xf32>
    %29 = vector.shape_cast %28 : vector<1x64x128xf32> to vector<64x128xf32>
    %30 = vector.shape_cast %27 : vector<64x128xf32> to vector<1x64x128xf32>
    tpu.vector_store %arg4[%c1_16, %c0_17, %c0_18], %30 {strides = array<i32>} : memref<2x64x128xf32, #tpu.memory_space<vmem>>, vector<1x64x128xf32>,
    return
  }
  func.func @transform_0(%arg0: i32, %arg1: i32) -> (i32, i32, i32) {
    %c0_i32 = arith.constant 0 : i32
    %c0_i32_0 = arith.constant 0 : i32
    %c0_i32_1 = arith.constant 0 : i32
    return %c0_i32, %arg0, %c0_i32_0 : i32, i32, i32
  }
  func.func @transform_1(%arg0: i32, %arg1: i32) -> (i32, i32, i32) {
    %c0_i32 = arith.constant 0 : i32
    %c0_i32_0 = arith.constant 0 : i32
    return %arg1, %arg0, %c0_i32 : i32, i32, i32
  }
  func.func @transform_2(%arg0: i32, %arg1: i32) -> (i32, i32, i32) {
    %c0_i32 = arith.constant 0 : i32
    %c0_i32_0 = arith.constant 0 : i32
    return %arg1, %arg0, %c0_i32 : i32, i32, i32
  }
}

</mosaic_0001>

<bundles_post_ra>
// kernel: tpu_custom_call.1
= control target key start
LH: loop header
LB: loop body
LE: loop exit
PB: predicated region body
PF: predicated region fallthrough
CT: control target
= control target key end

     0   :  { %7 = vsyncpa [#allocation3], 0  ;;  %s594_s0 = inlined_call_operand.hbm [shape: f32[2,64,128], index: 0, kind: input, shape index: {}]   ;;  %s595_s1 = inlined_call_operand.hbm [shape: f32[2,64,128], index: 1, kind: input, shape index: {}]   ;;  %s596_s2 = inlined_call_operand.hbm [shape: f32[2,64,128], index: 2, kind: output, shape index: {}]  }
   0x1   :  { %8 = vsyncpa [#allocation6], 0 }
   0x2   :  { %9 = vsyncpa [#allocation4], 0  ;;  %s320_s9 = smov [#allocation2]   ;;  %s248_s13 = scalar_lea.hbm %s594_s0, 2048 }
   0x3   :  { %s15_s10 = sshll.u32 %s320_s9, 4  ;;  %p249_p0 = scmp.ne.s32.totalorder %s594_s0, %s248_s13  ;;  %s16_s10 = int_to_ptr.vmem [resolvable:$true] %s15_s10 }
   0x4   :  { %p252_p1 = scmp.lt.u32.totalorder %s248_s13, %s594_s0 }
   0x6   :  { %p254_p2 = pnand %p252_p1, %p249_p0 }
   0x8   :  { %257 = shalt.err (!%p254_p2)
}
   0x9   :  { %s258_s18 = scalar_lea.vmem %s16_s10, 2048  ;;  %p263_p4 = scmp.lt.s32.totalorder %s16_s10, %s16_s10 }
   0xa   :  { %p259_p3 = scmp.ne.s32.totalorder %s16_s10, %s258_s18  ;;  %p264_p5 = scmp.lt.s32.totalorder %s258_s18, %s258_s18 }
   0xc   :  { %p265_p6 = por %p264_p5, %p263_p4 }
   0xe   :  { %p266_p7 = pnand %p265_p6, %p259_p3 }
  0x10   :  { %269 = shalt.err (!%p266_p7)
}
  0x11   :  { %s321_s19 = smov 128   ;;  %s322_s20 = smov 8  }
  0x12   :  { %21 = dma.hbm_to_vmem [thread:$0]  %s594_s0, 2048, %s16_s10, [#allocation3], %s321_s19, %s321_s19, %s322_s20  }
  0x13   :  { %s323_s23 = smov [#allocation5]   ;;  %s270_s27 = scalar_lea.hbm %s595_s1, 2048 }
  0x14   :  { %s27_s24 = sshll.u32 %s323_s23, 4  ;;  %p271_p8 = scmp.ne.s32.totalorder %s595_s1, %s270_s27  ;;  %s28_s24 = int_to_ptr.vmem [resolvable:$true] %s27_s24 }
  0x15   :  { %p274_p9 = scmp.lt.u32.totalorder %s270_s27, %s595_s1 }
  0x17   :  { %p276_p10 = pnand %p274_p9, %p271_p8 }
  0x19   :  { %279 = shalt.err (!%p276_p10)
}
  0x1a   :  { %s280_s4 = scalar_lea.vmem %s28_s24, 2048  ;;  %p285_p12 = scmp.lt.s32.totalorder %s28_s24, %s28_s24 }
  0x1b   :  { %p281_p11 = scmp.ne.s32.totalorder %s28_s24, %s280_s4  ;;  %p286_p13 = scmp.lt.s32.totalorder %s280_s4, %s280_s4 }
  0x1d   :  { %p287_p0 = por %p286_p13, %p285_p12 }
  0x1f   :  { %p288_p1 = pnand %p287_p0, %p281_p11 }
  0x21   :  { %291 = shalt.err (!%p288_p1)
}
  0x22   :  { %33 = dma.hbm_to_vmem [thread:$0]  %s595_s1, 2048, %s28_s24, [#allocation6], %s321_s19, %s321_s19, %s322_s20  }
  0x23   :  { %314 = dma.done.wait [#allocation3], 2048  }
  0x24   :  { %315 = vsyncadd [#allocation3], 4294965248 }
  0x25   :  { %316 = dma.done.wait [#allocation6], 2048  }
  0x26   :  { %317 = vsyncadd [#allocation6], 4294965248  ;;  %v372_v0 = vld [vmem:[#allocation5 + $0x10] sm:$0xff]  ;;  %v374_v1 = vld [vmem:[#allocation5] sm:$0xff]  ;;  %s324_s6 = smov 127   ;;  %s325_s1 = smov 1   ;;  %v57_v18 = vlaneseq }
  0x27   :  { %73 = vrot.lane.b32.xlu1 %v372_v0, %s324_s6  ;;  %69 = vrot.lane.b32.xlu0 %v374_v1, %s324_s6  ;;  %v380_v2 = vld [vmem:[#allocation5 + $0x18] sm:$0xff]  ;;  %v62_v3 = vld [vmem:[#allocation5 + $0x8] sm:$0xff]  ;;  %v387_v5 = vld [vmem:[#allocation5 + $0x20] sm:$0xff]  ;;  %s326_s7 = smov [#allocation7]  }
  0x28   :  { %v385_v4 = vld [vmem:[#allocation5 + $0x28] sm:$0xff]  ;;  %v393_v6 = vld [vmem:[#allocation5 + $0x38] sm:$0xff]  ;;  %v395_v7 = vld [vmem:[#allocation5 + $0x30] sm:$0xff]  ;;  %v58_v21 = vand.u32 127, %v57_v18  ;;  %s228_s8 = sshll.u32 %s326_s7, 4  ;;  %s229_s8 = int_to_ptr.vmem [resolvable:$true] %s228_s8 }
  0x29   :  { %v416_v8 = vld [vmem:[#allocation5 + $0x48] sm:$0xff]  ;;  %v418_v9 = vld [vmem:[#allocation5 + $0x40] sm:$0xff]  ;;  %v424_v10 = vld [vmem:[#allocation5 + $0x58] sm:$0xff]  ;;  %s292_s9 = scalar_lea.vmem %s229_s8, 2048  ;;  %p297_p3 = scmp.lt.s32.totalorder %s229_s8, %s229_s8 }
  0x2a   :  { %v426_v11 = vld [vmem:[#allocation5 + $0x50] sm:$0xff]  ;;  %v432_v12 = vld [vmem:[#allocation5 + $0x68] sm:$0xff]  ;;  %v434_v13 = vld [vmem:[#allocation5 + $0x60] sm:$0xff]  ;;  %v59_v24 = vand.u32 1, %v58_v21  ;;  %p293_p2 = scmp.ne.s32.totalorder %s229_s8, %s292_s9  ;;  %p298_p4 = scmp.lt.s32.totalorder %s292_s9, %s292_s9 }
  0x2b   :  { %75 = vrot.lane.b32.xlu1 %v380_v2, %s324_s6  ;;  %71 = vrot.lane.b32.xlu0 %v62_v3, %s324_s6  ;;  %v440_v14 = vld [vmem:[#allocation5 + $0x78] sm:$0xff]  ;;  %v442_v15 = vld [vmem:[#allocation5 + $0x70] sm:$0xff]  ;;  %v464_v27 = vld [vmem:[#allocation2] sm:$0xff] }
  0x2c   :  { %v466_v28 = vld [vmem:[#allocation2 + $0x8] sm:$0xff]  ;;  %vm468_vm0 = vcmp.eq.s32.totalorder %v59_v24, 0  ;;  %v474_v31 = vld [vmem:[#allocation2 + $0x40] sm:$0xff]  ;;  %v109_v32 = vmul.f32 %v374_v1, %v464_v27  ;;  %v479_v36 = vld [vmem:[#allocation2 + $0x10] sm:$0xff]  ;;  %p299_p5 = por %p298_p4, %p297_p3 }
  0x2d   :  { %v472_v30 = vld [vmem:[#allocation2 + $0x48] sm:$0xff]  ;;  %v110_v33 = vmul.f32 %v62_v3, %v466_v28  ;;  %v481_v37 = vld [vmem:[#allocation2 + $0x18] sm:$0xff]  ;;  %v491_v43 = vld [vmem:[#allocation2 + $0x50] sm:$0xff]  ;;  %v111_v44 = vmul.f32 %v372_v0, %v479_v36 }
  0x2e   :  { %v489_v42 = vld [vmem:[#allocation2 + $0x58] sm:$0xff]  ;;  %v112_v45 = vmul.f32 %v380_v2, %v481_v37  ;;  %v497_v50 = vld [vmem:[#allocation2 + $0x28] sm:$0xff]  ;;  %v499_v51 = vld [vmem:[#allocation2 + $0x20] sm:$0xff]  ;;  %p300_p6 = pnand %p299_p5, %p293_p2 }
  0x2f   :  { %79 = vrot.lane.b32.xlu1 %v385_v4, %s324_s6  ;;  %77 = vrot.lane.b32.xlu0 %v387_v5, %s324_s6  ;;  %v507_v56 = vld [vmem:[#allocation2 + $0x68] sm:$0xff]  ;;  %v509_v57 = vld [vmem:[#allocation2 + $0x60] sm:$0xff]  ;;  %v114_v58 = vmul.f32 %v385_v4, %v497_v50  ;;  %v113_v59 = vmul.f32 %v387_v5, %v499_v51 }
  0x33   :  { %83 = vrot.lane.b32.xlu1 %v393_v6, %s324_s6  ;;  %81 = vrot.lane.b32.xlu0 %v395_v7, %s324_s6 }
  0x37   :  { %87 = vrot.lane.b32.xlu1 %v62_v3, %s325_s1  ;;  %85 = vrot.lane.b32.xlu0 %v374_v1, %s325_s1  ;;  %v517_v1 = vld [vmem:[#allocation2 + $0x30] sm:$0xff] }
  0x3b   :  { %91 = vrot.lane.b32.xlu1 %v380_v2, %s325_s1  ;;  %89 = vrot.lane.b32.xlu0 %v372_v0, %s325_s1  ;;  %v515_v0 = vld [vmem:[#allocation2 + $0x38] sm:$0xff] }
  0x3c   :  { %v116_v18 = vmul.f32 %v393_v6, %v515_v0 }
  0x3f   :  { %95 = vrot.lane.b32.xlu1 %v385_v4, %s325_s1  ;;  %93 = vrot.lane.b32.xlu0 %v387_v5, %s325_s1 }
  0x43   :  { %99 = vrot.lane.b32.xlu1 %v393_v6, %s325_s1  ;;  %97 = vrot.lane.b32.xlu0 %v395_v7, %s325_s1 }
  0x47   :  { %152 = vrot.lane.b32.xlu1 %v416_v8, %s324_s6  ;;  %150 = vrot.lane.b32.xlu0 %v418_v9, %s324_s6 }
  0x4b   :  { %156 = vrot.lane.b32.xlu1 %v424_v10, %s324_s6  ;;  %154 = vrot.lane.b32.xlu0 %v426_v11, %s324_s6 }
  0x4f   :  { %160 = vrot.lane.b32.xlu1 %v432_v12, %s324_s6  ;;  %158 = vrot.lane.b32.xlu0 %v434_v13, %s324_s6 }
  0x53   :  { %164 = vrot.lane.b32.xlu1 %v440_v14, %s324_s6  ;;  %162 = vrot.lane.b32.xlu0 %v442_v15, %s324_s6 }
  0x57   :  { %168 = vrot.lane.b32.xlu1 %v416_v8, %s325_s1  ;;  %166 = vrot.lane.b32.xlu0 %v418_v9, %s325_s1 }
  0x5b   :  { %172 = vrot.lane.b32.xlu1 %v424_v10, %s325_s1  ;;  %170 = vrot.lane.b32.xlu0 %v426_v11, %s325_s1 }
  0x5f   :  { %176 = vrot.lane.b32.xlu1 %v432_v12, %s325_s1  ;;  %174 = vrot.lane.b32.xlu0 %v434_v13, %s325_s1 }
  0x63   :  { %180 = vrot.lane.b32.xlu1 %v440_v14, %s325_s1  ;;  %178 = vrot.lane.b32.xlu0 %v442_v15, %s325_s1 }
  0x99   :  { %v74_v16 = vpop.permute.xlu1 %73  ;;  %v70_v17 = vpop.permute.xlu0 %69 }
  0x9d   :  { %v76_v19 = vpop.permute.xlu1 %75  ;;  %v72_v20 = vpop.permute.xlu0 %71 }
  0xa1   :  { %v80_v22 = vpop.permute.xlu1 %79  ;;  %v78_v23 = vpop.permute.xlu0 %77 }
  0xa5   :  { %v84_v25 = vpop.permute.xlu1 %83  ;;  %v82_v26 = vpop.permute.xlu0 %81 }
  0xa9   :  { %v88_v34 = vpop.permute.xlu1 %87  ;;  %v86_v35 = vpop.permute.xlu0 %85 }
  0xaa   :  { %v102_v38 = vsel %vm468_vm0, %v72_v20, %v88_v34  ;;  %v101_v39 = vsel %vm468_vm0, %v70_v17, %v86_v35  ;;  %v527_v17 = vld [vmem:[#allocation2 + $0x70] sm:$0xff] }
  0xab   :  { %v118_v40 = vmul.f32 %v102_v38, %v472_v30  ;;  %v117_v41 = vmul.f32 %v101_v39, %v474_v31 }
  0xad   :  { %v126_v46 = vadd.f32 %v118_v40, %v110_v33  ;;  %v125_v47 = vadd.f32 %v117_v41, %v109_v32  ;;  %v92_v48 = vpop.permute.xlu1 %91  ;;  %v90_v49 = vpop.permute.xlu0 %89 }
  0xae   :  { %v104_v52 = vsel %vm468_vm0, %v76_v19, %v92_v48  ;;  %v103_v53 = vsel %vm468_vm0, %v74_v16, %v90_v49  ;;  %v525_v16 = vld [vmem:[#allocation2 + $0x78] sm:$0xff]  ;;  %v115_v19 = vmul.f32 %v395_v7, %v517_v1 }
  0xaf   :  { %134 = vst [vmem:[#allocation7 + $0x8] sm:$0xff] %v126_v46  ;;  %133 = vst [vmem:[#allocation7] sm:$0xff] %v125_v47  ;;  %v120_v54 = vmul.f32 %v104_v52, %v489_v42  ;;  %v119_v55 = vmul.f32 %v103_v53, %v491_v43  ;;  %v190_v46 = vmul.f32 %v418_v9, %v464_v27 }
  0xb1   :  { %v128_v60 = vadd.f32 %v120_v54, %v112_v45  ;;  %v127_v61 = vadd.f32 %v119_v55, %v111_v44  ;;  %v96_v62 = vpop.permute.xlu1 %95  ;;  %v94_v63 = vpop.permute.xlu0 %93  ;;  %v193_v55 = vmul.f32 %v424_v10, %v481_v37  ;;  %v195_v10 = vmul.f32 %v432_v12, %v497_v50 }
  0xb2   :  { %v106_v2 = vsel %vm468_vm0, %v80_v22, %v96_v62  ;;  %v105_v3 = vsel %vm468_vm0, %v78_v23, %v94_v63  ;;  %v197_v12 = vmul.f32 %v440_v14, %v515_v0 }
  0xb3   :  { %136 = vst [vmem:[#allocation7 + $0x18] sm:$0xff] %v128_v60  ;;  %135 = vst [vmem:[#allocation7 + $0x10] sm:$0xff] %v127_v61  ;;  %v122_v4 = vmul.f32 %v106_v2, %v507_v56  ;;  %v121_v5 = vmul.f32 %v105_v3, %v509_v57 }
  0xb5   :  { %v130_v20 = vadd.f32 %v122_v4, %v114_v58  ;;  %v129_v21 = vadd.f32 %v121_v5, %v113_v59  ;;  %v100_v22 = vpop.permute.xlu1 %99  ;;  %v98_v23 = vpop.permute.xlu0 %97 }
  0xb6   :  { %v108_v24 = vsel %vm468_vm0, %v84_v25, %v100_v22  ;;  %v107_v32 = vsel %vm468_vm0, %v82_v26, %v98_v23  ;;  %v191_v26 = vmul.f32 %v416_v8, %v466_v28  ;;  %v192_v8 = vmul.f32 %v426_v11, %v479_v36 }
  0xb7   :  { %138 = vst [vmem:[#allocation7 + $0x28] sm:$0xff] %v130_v20  ;;  %137 = vst [vmem:[#allocation7 + $0x20] sm:$0xff] %v129_v21  ;;  %v124_v33 = vmul.f32 %v108_v24, %v525_v16  ;;  %v123_v34 = vmul.f32 %v107_v32, %v527_v17  ;;  %v194_v11 = vmul.f32 %v434_v13, %v499_v51 }
  0xb8   :  { %v196_v13 = vmul.f32 %v442_v15, %v517_v1 }
  0xb9   :  { %v132_v6 = vadd.f32 %v124_v33, %v116_v18  ;;  %v131_v35 = vadd.f32 %v123_v34, %v115_v19  ;;  %v153_v38 = vpop.permute.xlu1 %152  ;;  %v151_v7 = vpop.permute.xlu0 %150 }
  0xbb   :  { %140 = vst [vmem:[#allocation7 + $0x38] sm:$0xff] %v132_v6  ;;  %139 = vst [vmem:[#allocation7 + $0x30] sm:$0xff] %v131_v35 }
  0xbd   :  { %v157_v39 = vpop.permute.xlu1 %156  ;;  %v155_v40 = vpop.permute.xlu0 %154 }
  0xc1   :  { %v161_v41 = vpop.permute.xlu1 %160  ;;  %v159_v44 = vpop.permute.xlu0 %158 }
  0xc5   :  { %v165_v25 = vpop.permute.xlu1 %164  ;;  %v163_v45 = vpop.permute.xlu0 %162 }
  0xc9   :  { %v169_v47 = vpop.permute.xlu1 %168  ;;  %v167_v48 = vpop.permute.xlu0 %166 }
  0xca   :  { %v183_v49 = vsel %vm468_vm0, %v153_v38, %v169_v47  ;;  %v182_v52 = vsel %vm468_vm0, %v151_v7, %v167_v48 }
  0xcb   :  { %v199_v53 = vmul.f32 %v183_v49, %v472_v30  ;;  %v198_v54 = vmul.f32 %v182_v52, %v474_v31 }
  0xcd   :  { %v207_v28 = vadd.f32 %v199_v53, %v191_v26  ;;  %v206_v9 = vadd.f32 %v198_v54, %v190_v46  ;;  %v173_v27 = vpop.permute.xlu1 %172  ;;  %v171_v58 = vpop.permute.xlu0 %170 }
  0xce   :  { %v185_v59 = vsel %vm468_vm0, %v157_v39, %v173_v27  ;;  %v184_v60 = vsel %vm468_vm0, %v155_v40, %v171_v58 }
  0xcf   :  { %216 = vst [vmem:[#allocation7 + $0x48] sm:$0xff] %v207_v28  ;;  %215 = vst [vmem:[#allocation7 + $0x40] sm:$0xff] %v206_v9  ;;  %v201_v30 = vmul.f32 %v185_v59, %v489_v42  ;;  %v200_v31 = vmul.f32 %v184_v60, %v491_v43 }
  0xd1   :  { %v209_v36 = vadd.f32 %v201_v30, %v193_v55  ;;  %v208_v37 = vadd.f32 %v200_v31, %v192_v8  ;;  %v177_v61 = vpop.permute.xlu1 %176  ;;  %v175_v62 = vpop.permute.xlu0 %174 }
  0xd2   :  { %v187_v63 = vsel %vm468_vm0, %v161_v41, %v177_v61  ;;  %v186_v2 = vsel %vm468_vm0, %v159_v44, %v175_v62 }
  0xd3   :  { %218 = vst [vmem:[#allocation7 + $0x58] sm:$0xff] %v209_v36  ;;  %217 = vst [vmem:[#allocation7 + $0x50] sm:$0xff] %v208_v37  ;;  %v203_v42 = vmul.f32 %v187_v63, %v507_v56  ;;  %v202_v43 = vmul.f32 %v186_v2, %v509_v57 }
  0xd5   :  { %v211_v50 = vadd.f32 %v203_v42, %v195_v10  ;;  %v210_v51 = vadd.f32 %v202_v43, %v194_v11  ;;  %v181_v3 = vpop.permute.xlu1 %180  ;;  %v179_v4 = vpop.permute.xlu0 %178 }
  0xd6   :  { %v189_v5 = vsel %vm468_vm0, %v165_v25, %v181_v3  ;;  %v188_v18 = vsel %vm468_vm0, %v163_v45, %v179_v4 }
  0xd7   :  { %220 = vst [vmem:[#allocation7 + $0x68] sm:$0xff] %v211_v50  ;;  %219 = vst [vmem:[#allocation7 + $0x60] sm:$0xff] %v210_v51  ;;  %v205_v56 = vmul.f32 %v189_v5, %v525_v16  ;;  %v204_v14 = vmul.f32 %v188_v18, %v527_v17 }
  0xd9   :  { %v213_v57 = vadd.f32 %v205_v56, %v197_v12  ;;  %v212_v15 = vadd.f32 %v204_v14, %v196_v13 }
  0xdb   :  { %222 = vst [vmem:[#allocation7 + $0x78] sm:$0xff] %v213_v57  ;;  %221 = vst [vmem:[#allocation7 + $0x70] sm:$0xff] %v212_v15 }
  0xdc   :  { %303 = shalt.err (!%p300_p6)
}
  0xdd   :  { %s304_s12 = scalar_lea.hbm %s596_s2, 2048 }
  0xde   :  { %p305_p7 = scmp.ne.s32.totalorder %s596_s2, %s304_s12  ;;  %p308_p8 = scmp.lt.u32.totalorder %s304_s12, %s596_s2 }
  0xe0   :  { %p310_p9 = pnand %p308_p8, %p305_p7 }
  0xe2   :  { %313 = shalt.err (!%p310_p9)
}
  0xe3   :  { %234 = dma.vmem_to_hbm [thread:$0]  %s229_s8, 2048, %s596_s2, [#allocation4], %s321_s19, %s321_s19, %s322_s20  }
  0xe4   :  { %318 = dma.done.wait [#allocation4], 2048  }
  0xe5   :  { %319 = vsyncadd [#allocation4], 4294965248 }
  0xe6   :  { %238 = vsyncpa [#allocation3], 1 }
  0xe7   :  { %239 = vsyncpa [#allocation6], 1 }
  0xe8   :  { %240 = vsyncpa [#allocation4], 1 }

</bundles_post_ra>
